<compile_context>
chip_gen: v7x
topology: tpu7x:2x2x1
jax: 0.10.0
libtpu: 0.0.40
codegen_flags: <defaults>
</compile_context>

<pallas_src>
from functools import partial

import jax
import jax.numpy as jnp
from jax import lax
from jax.experimental import pallas as pl
from jax.experimental.pallas import tpu as pltpu


def _spatial_attention_kernel(w_ref, b_ref, mask_ref, x_ref, o_ref, pad_ref,
                              *, H, W, KH, KW, HW, maxoff):
    # w_ref:    SMEM (2*KH*KW,) f32   [avg taps (pre-scaled by 1/C), max taps]
    # b_ref:    SMEM (1,) f32
    # mask_ref: VMEM (KW, HW) f32     per-dw column-boundary masks (0/1), resident
    # x_ref:    VMEM (1, C, HW)       one batch element, lane-dense
    # o_ref:    VMEM (1, C, HW)
    # pad_ref:  VMEM (2, HW + 2*maxoff) f32 scratch: zero-extended flat avg/max maps
    x = x_ref[0]                                              # (C, HW) native dtype

    # Channel reductions (mean's 1/C is folded into the avg-tap weights).
    s = jnp.sum(x, axis=0, keepdims=True, dtype=jnp.float32)  # (1, HW)
    m = jnp.max(x, axis=0, keepdims=True).astype(jnp.float32) # (1, HW)

    # Zero-extended flat maps: pad_ref[:, maxoff + i] = map[i], zeros elsewhere.
    # A tap offset d = dh*W + dw then becomes the static lane slice
    # pad[maxoff+d : maxoff+d+HW]; rows shifted out of [0, H) read zeros, and
    # column wrap-around is killed by the per-dw masks.
    pad_ref[...] = jnp.zeros_like(pad_ref)
    pad_ref[0:1, maxoff:maxoff + HW] = s
    pad_ref[1:2, maxoff:maxoff + HW] = m
    sp = pad_ref[0:1, :]                                      # (1, HW + 2*maxoff)
    mp = pad_ref[1:2, :]

    # Hoist the KW boundary masks out of the tap loop.
    masks = [mask_ref[kw:kw + 1, :] for kw in range(KW)]      # each (1, HW)

    ph = (KH - 1) // 2
    pw = (KW - 1) // 2
    acc = jnp.zeros((1, HW), jnp.float32) + b_ref[0]          # bias folded into init
    for kh in range(KH):                                      # static unroll over taps
        dh = kh - ph
        for kw in range(KW):
            dw = kw - pw
            start = maxoff + dh * W + dw                      # always >= 0
            wa = w_ref[kh * KW + kw]                          # avg tap (already / C)
            wm = w_ref[KH * KW + kh * KW + kw]                # max tap
            tap = wa * sp[:, start:start + HW] + wm * mp[:, start:start + HW]
            acc = acc + masks[kw] * tap

    # x * tanh(conv) + x  ==  x * (tanh(conv) + 1); gain stays a tiny (1, HW) map.
    gain = (jnp.tanh(acc) + 1.0).astype(x.dtype)
    o_ref[0] = (x * gain).astype(o_ref.dtype)


def spatial_attention(x, conv_w, conv_b):
    """x: (N, C, H, W); conv_w: (1, 2, KH, KW); conv_b: (1,)."""
    N, C, H, W = x.shape
    _, _, KH, KW = conv_w.shape
    assert KH % 2 == 1 and KW % 2 == 1, "only odd kernel sizes (symmetric 'same' pad)"
    ph, pw = (KH - 1) // 2, (KW - 1) // 2
    HW = H * W
    maxoff = ph * W + pw
    HWpad = HW + 2 * maxoff

    # Lane-dense view of x: (N, C, H*W). Free (contiguous) reshape, no HBM copy.
    x_flat = x.reshape(N, C, HW)

    # Fold 1/C of the channel mean into the avg-channel taps.
    w = conv_w.astype(jnp.float32) * jnp.array([1.0 / C, 1.0],
                                               dtype=jnp.float32).reshape(1, 2, 1, 1)
    w_flat = w.reshape(-1)                                    # (2*KH*KW,)
    b_flat = conv_b.reshape(-1).astype(jnp.float32)           # (1,)

    # Per-dw column-validity masks for the flattened layout (built once, 0/1 f32).
    w_idx = jnp.arange(HW, dtype=jnp.int32) % W
    masks = jnp.stack(
        [((w_idx + (kw - pw) >= 0) & (w_idx + (kw - pw) < W)).astype(jnp.float32)
         for kw in range(KW)], axis=0)                        # (KW, HW)

    kernel = partial(_spatial_attention_kernel, H=H, W=W, KH=KH, KW=KW,
                     HW=HW, maxoff=maxoff)
    out_flat = pl.pallas_call(
        kernel,
        out_shape=jax.ShapeDtypeStruct((N, C, HW), x.dtype),
        grid=(N,),
        in_specs=[
            pl.BlockSpec(memory_space=pltpu.SMEM),                 # conv taps
            pl.BlockSpec(memory_space=pltpu.SMEM),                 # conv bias
            pl.BlockSpec((KW, HW), lambda b: (0, 0)),              # boundary masks (resident)
            pl.BlockSpec((1, C, HW), lambda b: (b, 0, 0)),         # x, lane-dense
        ],
        out_specs=pl.BlockSpec((1, C, HW), lambda b: (b, 0, 0)),
        scratch_shapes=[pltpu.VMEM((2, HWpad), jnp.float32)],
        compiler_params=pltpu.CompilerParams(dimension_semantics=("parallel",)),
    )(w_flat, b_flat, masks, x_flat)
    return out_flat.reshape(N, C, H, W)


def spatial_attention_ref(x, conv_w, conv_b):
    """Pure-JAX reference mirroring the PyTorch forward."""
    avg = jnp.mean(x, axis=1, keepdims=True)
    mx = jnp.max(x, axis=1, keepdims=True)
    cat = jnp.concatenate([avg, mx], axis=1)
    conv = lax.conv_general_dilated(
        cat, conv_w, window_strides=(1, 1), padding="SAME",
        dimension_numbers=("NCHW", "OIHW", "NCHW"))
    conv = conv + conv_b.reshape(1, -1, 1, 1)
    attn = jnp.tanh(conv)
    return x * attn + x


if __name__ == "__main__":
    key = jax.random.PRNGKey(0)
    kx, kw, kb = jax.random.split(key, 3)

    N, C, H, W = 2, 4, 16, 16
    kernel_size_spa = 3

    x = jax.random.normal(kx, (N, C, H, W), dtype=jnp.float32)
    # Deterministic synthetic Conv2d(2 -> 1, k, padding='same') params.
    conv_w = 0.1 * jax.random.normal(kw, (1, 2, kernel_size_spa, kernel_size_spa),
                                     dtype=jnp.float32)
    conv_b = 0.05 * jax.random.normal(kb, (1,), dtype=jnp.float32)

    out = jax.block_until_ready(spatial_attention(x, conv_w, conv_b))
    ref = jax.block_until_ready(spatial_attention_ref(x, conv_w, conv_b))

    assert out.shape == (N, C, H, W)
    assert jnp.allclose(out, ref, atol=1e-5, rtol=1e-5), "mismatch vs reference"
    print("KERNEL_OK")
</pallas_src>

<mosaic_0001>
module attributes {stable_mosaic.version = 11 : i64} {
  func.func @_spatial_attention_kernel(%arg0: i32, %arg1: memref<18xf32, #tpu.memory_space<smem>>, %arg2: memref<1xf32, #tpu.memory_space<smem>>, %arg3: memref<3x256xf32, #tpu.memory_space<vmem>>, %arg4: memref<1x4x256xf32, #tpu.memory_space<vmem>>, %arg5: memref<1x4x256xf32, #tpu.memory_space<vmem>>, %arg6: memref<2x290xf32, #tpu.memory_space<vmem>>) attributes {dimension_semantics = [#tpu.dimension_semantics<parallel>], iteration_bounds = array<i64: 2>, scalar_prefetch = 0 : i64, scratch_operands = 1 : i64, tpu.core_type = #tpu.core_type<tc>, window_params = [{transform_indices = @transform_0, window_bounds = array<i64: 18>}, {transform_indices = @transform_1, window_bounds = array<i64: 1>}, {pipeline_mode = #tpu.pipeline_mode<synchronous>, transform_indices = @transform_2, window_bounds = array<i64: 3, 256>}, {transform_indices = @transform_3, window_bounds = array<i64: 1, 4, 256>}, {transform_indices = @transform_4, window_bounds = array<i64: 1, 4, 256>}]} {
    %c0 = arith.constant 0 : index
    %c0_0 = arith.constant 0 : index
    %c0_1 = arith.constant 0 : index
    %0 = vector.load %arg4[%c0, %c0_0, %c0_1] : memref<1x4x256xf32, #tpu.memory_space<vmem>>, vector<1x4x256xf32>
    %1 = vector.shape_cast %0 : vector<1x4x256xf32> to vector<4x256xf32>
    %cst = arith.constant dense<0.000000e+00> : vector<256xf32>
    %2 = vector.multi_reduction <add>, %1, %cst [0] : vector<4x256xf32> to vector<256xf32>
    %3 = vector.shape_cast %2 : vector<256xf32> to vector<1x256xf32>
    %cst_2 = arith.constant dense<0xFF800000> : vector<256xf32>
    %4 = vector.multi_reduction <maximumf>, %1, %cst_2 [0] : vector<4x256xf32> to vector<256xf32>
    %5 = vector.shape_cast %4 : vector<256xf32> to vector<1x256xf32>
    %cst_3 = arith.constant 0.000000e+00 : f32
    %6 = vector.broadcast %cst_3 : f32 to vector<2x290xf32>
    %c0_4 = arith.constant 0 : index
    %c0_5 = arith.constant 0 : index
    %7 = vector.load %arg6[%c0_4, %c0_5] : memref<2x290xf32, #tpu.memory_space<vmem>>, vector<2x290xf32>
    tpu.vector_store %arg6[%c0_4, %c0_5], %6 {strides = array<i32>} : memref<2x290xf32, #tpu.memory_space<vmem>>, vector<2x290xf32>,
    %c0_6 = arith.constant 0 : index
    %c17 = arith.constant 17 : index
    %8 = vector.load %arg6[%c0_6, %c17] : memref<2x290xf32, #tpu.memory_space<vmem>>, vector<1x256xf32>
    tpu.vector_store %arg6[%c0_6, %c17], %3 {strides = array<i32>} : memref<2x290xf32, #tpu.memory_space<vmem>>, vector<1x256xf32>,
    %c1 = arith.constant 1 : index
    %c17_7 = arith.constant 17 : index
    %9 = vector.load %arg6[%c1, %c17_7] : memref<2x290xf32, #tpu.memory_space<vmem>>, vector<1x256xf32>
    tpu.vector_store %arg6[%c1, %c17_7], %5 {strides = array<i32>} : memref<2x290xf32, #tpu.memory_space<vmem>>, vector<1x256xf32>,
    %c0_8 = arith.constant 0 : index
    %c0_9 = arith.constant 0 : index
    %10 = vector.load %arg6[%c0_8, %c0_9] : memref<2x290xf32, #tpu.memory_space<vmem>>, vector<1x290xf32>
    %c1_10 = arith.constant 1 : index
    %c0_11 = arith.constant 0 : index
    %11 = vector.load %arg6[%c1_10, %c0_11] : memref<2x290xf32, #tpu.memory_space<vmem>>, vector<1x290xf32>
    %c0_12 = arith.constant 0 : index
    %c0_13 = arith.constant 0 : index
    %12 = vector.load %arg3[%c0_12, %c0_13] : memref<3x256xf32, #tpu.memory_space<vmem>>, vector<1x256xf32>
    %c1_14 = arith.constant 1 : index
    %c0_15 = arith.constant 0 : index
    %13 = vector.load %arg3[%c1_14, %c0_15] : memref<3x256xf32, #tpu.memory_space<vmem>>, vector<1x256xf32>
    %c2 = arith.constant 2 : index
    %c0_16 = arith.constant 0 : index
    %14 = vector.load %arg3[%c2, %c0_16] : memref<3x256xf32, #tpu.memory_space<vmem>>, vector<1x256xf32>
    %cst_17 = arith.constant 0.000000e+00 : f32
    %15 = vector.broadcast %cst_17 : f32 to vector<1x256xf32>
    %c0_18 = arith.constant 0 : index
    %16 = memref.load %arg2[%c0_18] : memref<1xf32, #tpu.memory_space<smem>>
    %17 = vector.broadcast %16 : f32 to vector<1x256xf32>
    %18 = arith.addf %15, %17 : vector<1x256xf32>
    %c0_19 = arith.constant 0 : index
    %19 = memref.load %arg1[%c0_19] : memref<18xf32, #tpu.memory_space<smem>>
    %c9 = arith.constant 9 : index
    %20 = memref.load %arg1[%c9] : memref<18xf32, #tpu.memory_space<smem>>
    %21 = vector.extract_strided_slice %10 {offsets = [0, 0], sizes = [1, 256], strides = [1, 1]} : vector<1x290xf32> to vector<1x256xf32>
    %22 = vector.broadcast %19 : f32 to vector<1x256xf32>
    %23 = arith.mulf %22, %21 : vector<1x256xf32>
    %24 = vector.extract_strided_slice %11 {offsets = [0, 0], sizes = [1, 256], strides = [1, 1]} : vector<1x290xf32> to vector<1x256xf32>
    %25 = vector.broadcast %20 : f32 to vector<1x256xf32>
    %26 = arith.mulf %25, %24 : vector<1x256xf32>
    %27 = arith.addf %23, %26 : vector<1x256xf32>
    %28 = arith.mulf %12, %27 : vector<1x256xf32>
    %29 = arith.addf %18, %28 : vector<1x256xf32>
    %c1_20 = arith.constant 1 : index
    %30 = memref.load %arg1[%c1_20] : memref<18xf32, #tpu.memory_space<smem>>
    %c10 = arith.constant 10 : index
    %31 = memref.load %arg1[%c10] : memref<18xf32, #tpu.memory_space<smem>>
    %32 = vector.extract_strided_slice %10 {offsets = [0, 1], sizes = [1, 256], strides = [1, 1]} : vector<1x290xf32> to vector<1x256xf32>
    %33 = vector.broadcast %30 : f32 to vector<1x256xf32>
    %34 = arith.mulf %33, %32 : vector<1x256xf32>
    %35 = vector.extract_strided_slice %11 {offsets = [0, 1], sizes = [1, 256], strides = [1, 1]} : vector<1x290xf32> to vector<1x256xf32>
    %36 = vector.broadcast %31 : f32 to vector<1x256xf32>
    %37 = arith.mulf %36, %35 : vector<1x256xf32>
    %38 = arith.addf %34, %37 : vector<1x256xf32>
    %39 = arith.mulf %13, %38 : vector<1x256xf32>
    %40 = arith.addf %29, %39 : vector<1x256xf32>
    %c2_21 = arith.constant 2 : index
    %41 = memref.load %arg1[%c2_21] : memref<18xf32, #tpu.memory_space<smem>>
    %c11 = arith.constant 11 : index
    %42 = memref.load %arg1[%c11] : memref<18xf32, #tpu.memory_space<smem>>
    %43 = vector.extract_strided_slice %10 {offsets = [0, 2], sizes = [1, 256], strides = [1, 1]} : vector<1x290xf32> to vector<1x256xf32>
    %44 = vector.broadcast %41 : f32 to vector<1x256xf32>
    %45 = arith.mulf %44, %43 : vector<1x256xf32>
    %46 = vector.extract_strided_slice %11 {offsets = [0, 2], sizes = [1, 256], strides = [1, 1]} : vector<1x290xf32> to vector<1x256xf32>
    %47 = vector.broadcast %42 : f32 to vector<1x256xf32>
    %48 = arith.mulf %47, %46 : vector<1x256xf32>
    %49 = arith.addf %45, %48 : vector<1x256xf32>
    %50 = arith.mulf %14, %49 : vector<1x256xf32>
    %51 = arith.addf %40, %50 : vector<1x256xf32>
    %c3 = arith.constant 3 : index
    %52 = memref.load %arg1[%c3] : memref<18xf32, #tpu.memory_space<smem>>
    %c12 = arith.constant 12 : index
    %53 = memref.load %arg1[%c12] : memref<18xf32, #tpu.memory_space<smem>>
    %54 = vector.extract_strided_slice %10 {offsets = [0, 16], sizes = [1, 256], strides = [1, 1]} : vector<1x290xf32> to vector<1x256xf32>
    %55 = vector.broadcast %52 : f32 to vector<1x256xf32>
    %56 = arith.mulf %55, %54 : vector<1x256xf32>
    %57 = vector.extract_strided_slice %11 {offsets = [0, 16], sizes = [1, 256], strides = [1, 1]} : vector<1x290xf32> to vector<1x256xf32>
    %58 = vector.broadcast %53 : f32 to vector<1x256xf32>
    %59 = arith.mulf %58, %57 : vector<1x256xf32>
    %60 = arith.addf %56, %59 : vector<1x256xf32>
    %61 = arith.mulf %12, %60 : vector<1x256xf32>
    %62 = arith.addf %51, %61 : vector<1x256xf32>
    %c4 = arith.constant 4 : index
    %63 = memref.load %arg1[%c4] : memref<18xf32, #tpu.memory_space<smem>>
    %c13 = arith.constant 13 : index
    %64 = memref.load %arg1[%c13] : memref<18xf32, #tpu.memory_space<smem>>
    %65 = vector.extract_strided_slice %10 {offsets = [0, 17], sizes = [1, 256], strides = [1, 1]} : vector<1x290xf32> to vector<1x256xf32>
    %66 = vector.broadcast %63 : f32 to vector<1x256xf32>
    %67 = arith.mulf %66, %65 : vector<1x256xf32>
    %68 = vector.extract_strided_slice %11 {offsets = [0, 17], sizes = [1, 256], strides = [1, 1]} : vector<1x290xf32> to vector<1x256xf32>
    %69 = vector.broadcast %64 : f32 to vector<1x256xf32>
    %70 = arith.mulf %69, %68 : vector<1x256xf32>
    %71 = arith.addf %67, %70 : vector<1x256xf32>
    %72 = arith.mulf %13, %71 : vector<1x256xf32>
    %73 = arith.addf %62, %72 : vector<1x256xf32>
    %c5 = arith.constant 5 : index
    %74 = memref.load %arg1[%c5] : memref<18xf32, #tpu.memory_space<smem>>
    %c14 = arith.constant 14 : index
    %75 = memref.load %arg1[%c14] : memref<18xf32, #tpu.memory_space<smem>>
    %76 = vector.extract_strided_slice %10 {offsets = [0, 18], sizes = [1, 256], strides = [1, 1]} : vector<1x290xf32> to vector<1x256xf32>
    %77 = vector.broadcast %74 : f32 to vector<1x256xf32>
    %78 = arith.mulf %77, %76 : vector<1x256xf32>
    %79 = vector.extract_strided_slice %11 {offsets = [0, 18], sizes = [1, 256], strides = [1, 1]} : vector<1x290xf32> to vector<1x256xf32>
    %80 = vector.broadcast %75 : f32 to vector<1x256xf32>
    %81 = arith.mulf %80, %79 : vector<1x256xf32>
    %82 = arith.addf %78, %81 : vector<1x256xf32>
    %83 = arith.mulf %14, %82 : vector<1x256xf32>
    %84 = arith.addf %73, %83 : vector<1x256xf32>
    %c6 = arith.constant 6 : index
    %85 = memref.load %arg1[%c6] : memref<18xf32, #tpu.memory_space<smem>>
    %c15 = arith.constant 15 : index
    %86 = memref.load %arg1[%c15] : memref<18xf32, #tpu.memory_space<smem>>
    %87 = vector.extract_strided_slice %10 {offsets = [0, 32], sizes = [1, 256], strides = [1, 1]} : vector<1x290xf32> to vector<1x256xf32>
    %88 = vector.broadcast %85 : f32 to vector<1x256xf32>
    %89 = arith.mulf %88, %87 : vector<1x256xf32>
    %90 = vector.extract_strided_slice %11 {offsets = [0, 32], sizes = [1, 256], strides = [1, 1]} : vector<1x290xf32> to vector<1x256xf32>
    %91 = vector.broadcast %86 : f32 to vector<1x256xf32>
    %92 = arith.mulf %91, %90 : vector<1x256xf32>
    %93 = arith.addf %89, %92 : vector<1x256xf32>
    %94 = arith.mulf %12, %93 : vector<1x256xf32>
    %95 = arith.addf %84, %94 : vector<1x256xf32>
    %c7 = arith.constant 7 : index
    %96 = memref.load %arg1[%c7] : memref<18xf32, #tpu.memory_space<smem>>
    %c16 = arith.constant 16 : index
    %97 = memref.load %arg1[%c16] : memref<18xf32, #tpu.memory_space<smem>>
    %98 = vector.extract_strided_slice %10 {offsets = [0, 33], sizes = [1, 256], strides = [1, 1]} : vector<1x290xf32> to vector<1x256xf32>
    %99 = vector.broadcast %96 : f32 to vector<1x256xf32>
    %100 = arith.mulf %99, %98 : vector<1x256xf32>
    %101 = vector.extract_strided_slice %11 {offsets = [0, 33], sizes = [1, 256], strides = [1, 1]} : vector<1x290xf32> to vector<1x256xf32>
    %102 = vector.broadcast %97 : f32 to vector<1x256xf32>
    %103 = arith.mulf %102, %101 : vector<1x256xf32>
    %104 = arith.addf %100, %103 : vector<1x256xf32>
    %105 = arith.mulf %13, %104 : vector<1x256xf32>
    %106 = arith.addf %95, %105 : vector<1x256xf32>
    %c8 = arith.constant 8 : index
    %107 = memref.load %arg1[%c8] : memref<18xf32, #tpu.memory_space<smem>>
    %c17_22 = arith.constant 17 : index
    %108 = memref.load %arg1[%c17_22] : memref<18xf32, #tpu.memory_space<smem>>
    %109 = vector.extract_strided_slice %10 {offsets = [0, 34], sizes = [1, 256], strides = [1, 1]} : vector<1x290xf32> to vector<1x256xf32>
    %110 = vector.broadcast %107 : f32 to vector<1x256xf32>
    %111 = arith.mulf %110, %109 : vector<1x256xf32>
    %112 = vector.extract_strided_slice %11 {offsets = [0, 34], sizes = [1, 256], strides = [1, 1]} : vector<1x290xf32> to vector<1x256xf32>
    %113 = vector.broadcast %108 : f32 to vector<1x256xf32>
    %114 = arith.mulf %113, %112 : vector<1x256xf32>
    %115 = arith.addf %111, %114 : vector<1x256xf32>
    %116 = arith.mulf %14, %115 : vector<1x256xf32>
    %117 = arith.addf %106, %116 : vector<1x256xf32>
    %118 = math.tanh %117 : vector<1x256xf32>
    %cst_23 = arith.constant 1.000000e+00 : f32
    %119 = vector.broadcast %cst_23 : f32 to vector<1x256xf32>
    %120 = arith.addf %118, %119 : vector<1x256xf32>
    %121 = vector.broadcast %120 : vector<1x256xf32> to vector<4x256xf32>
    %122 = arith.mulf %1, %121 : vector<4x256xf32>
    %c0_24 = arith.constant 0 : index
    %c0_25 = arith.constant 0 : index
    %c0_26 = arith.constant 0 : index
    %123 = vector.load %arg5[%c0_24, %c0_25, %c0_26] : memref<1x4x256xf32, #tpu.memory_space<vmem>>, vector<1x4x256xf32>
    %124 = vector.shape_cast %123 : vector<1x4x256xf32> to vector<4x256xf32>
    %125 = vector.shape_cast %122 : vector<4x256xf32> to vector<1x4x256xf32>
    tpu.vector_store %arg5[%c0_24, %c0_25, %c0_26], %125 {strides = array<i32>} : memref<1x4x256xf32, #tpu.memory_space<vmem>>, vector<1x4x256xf32>,
    return
  }
  func.func @transform_0(%arg0: i32) -> i32 {
    %c0_i32 = arith.constant 0 : i32
    %c0_i32_0 = arith.constant 0 : i32
    return %c0_i32 : i32
  }
  func.func @transform_1(%arg0: i32) -> i32 {
    %c0_i32 = arith.constant 0 : i32
    %c0_i32_0 = arith.constant 0 : i32
    return %c0_i32 : i32
  }
  func.func @transform_2(%arg0: i32) -> (i32, i32) {
    %c0_i32 = arith.constant 0 : i32
    %c0_i32_0 = arith.constant 0 : i32
    %c0_i32_1 = arith.constant 0 : i32
    return %c0_i32, %c0_i32_0 : i32, i32
  }
  func.func @transform_3(%arg0: i32) -> (i32, i32, i32) {
    %c0_i32 = arith.constant 0 : i32
    %c0_i32_0 = arith.constant 0 : i32
    %c0_i32_1 = arith.constant 0 : i32
    return %arg0, %c0_i32, %c0_i32_0 : i32, i32, i32
  }
  func.func @transform_4(%arg0: i32) -> (i32, i32, i32) {
    %c0_i32 = arith.constant 0 : i32
    %c0_i32_0 = arith.constant 0 : i32
    %c0_i32_1 = arith.constant 0 : i32
    return %arg0, %c0_i32, %c0_i32_0 : i32, i32, i32
  }
}

</mosaic_0001>

<bundles_post_ra>
// kernel: tpu_custom_call.1
= control target key start
LH: loop header
LB: loop body
LE: loop exit
PB: predicated region body
PF: predicated region fallthrough
CT: control target
= control target key end

     0   :  { %s1212_s0 = inlined_call_operand.vmem [shape: f32[18], index: 0, kind: input, shape index: {}]   ;;  %s1213_s1 = inlined_call_operand.<no memory space> [shape: f32[1], index: 1, kind: input, shape index: {}]   ;;  %s1214_s2 = inlined_call_operand.hbm [shape: f32[3,256], index: 2, kind: input, shape index: {}]   ;;  %s1215_s3 = inlined_call_operand.hbm [shape: f32[2,4,256], index: 3, kind: input, shape index: {}]   ;;  %s1216_s4 = inlined_call_operand.hbm [shape: f32[2,4,256], index: 4, kind: output, shape index: {}]  }
   0x1   :  { %9 = sst [smem:[#allocation3]] %s1213_s1 }
   0x2   :  { %10 = vsyncpa [#allocation7], 0 }
   0x3   :  { %11 = vsyncpa [#allocation5], 0 }
   0x4   :  { %12 = vsyncpa [#allocation10], 0 }
   0x5   :  { %14 = vsyncpa [#allocation10 + $0x1], 0 }
   0x6   :  { %15 = vsyncpa [#allocation6], 0 }
   0x7   :  { %17 = vsyncpa [#allocation6 + $0x1], 0  ;;  %s914_s17 = smov 0   ;;  %s916_s18 = smov 0  }
   0x8   :  { %s918_s19 = smov 0   ;;  %s920_s20 = smov 0  }
   0x9 LB: > { %s935_s1 = sadd.s32 4294967295, %s869_s20   ;;  %s604_s21 = sadd.s32 4294967294, %s869_s20   ;;  %s869_s20 = sphi %s920_s20, %s1242_s20   ;;  %s865_s19 = sphi %s918_s19, %s1241_s19   ;;  %s861_s18 = sphi %s916_s18, %s1240_s18   ;;  %s857_s17 = sphi %s914_s17, %s1239_s17  }
   0xa   : > { %p106_p0 = scmp.ne.s32.totalorder %s861_s18, %s857_s17  ;;  %p1217_p1 = scmp.eq.s32.totalorder %s935_s1, 0 }
   0xb   : > { %p136_p3 = scmp.eq.s32.totalorder %s604_s21, 1  ;;  %p605_p5 = scmp.ge.s32.totalorder %s869_s20, 1 }
   0xc   : > { %p944_p4 = por %p1217_p1, %p106_p0  ;;  %p143_p7 = scmp.lt.s32.totalorder %s869_s20, 3 }
   0xd   : > { %p949_p6 = por %p136_p3, %p106_p0  ;;  %s156_s26 = sshll.u32 %s1212_s0, 4  ;;  %s157_s26 = int_to_ptr.vmem [resolvable:$true] %s156_s26 }
   0xe   : > { %s1220_s22 = scalar_select %p944_p4, 1, 0 }
   0xf   : > { %s1221_s23 = scalar_select %p949_p6, 1, 0 }
  0x10   : > { %p957_p8 = pnand %p605_p5, %p143_p7  ;;  %s871_s28 = smov [#allocation8]  }
  0x11   : > { %s170_s29 = sshll.u32 %s871_s28, 4  ;;  %s973_s5 = sadd.s32 1, %s869_s20   ;;  %s970_s29 = int_to_ptr.vmem [resolvable:$true] %s170_s29 }
  0x12   : > { %p653_p10 = pneg %p957_p8  ;;  %s90_s6 = ssub.s32 %s869_s20, %s973_s5 }
  0x13   : > { %s722_s7 = scalar_lea.vmem %s157_s26, 16  ;;  %p730_p5 = scmp.lt.s32.totalorder %s157_s26, %s157_s26 }
  0x14   : > { %p966_p11 = pnand %p653_p10, %p1217_p1  ;;  %p723_p12 = scmp.ne.s32.totalorder %s157_s26, %s722_s7 }
  0x15   : > { %p731_p7 = scmp.lt.s32.totalorder %s722_s7, %s722_s7 }
  0x16   : > { %p724_p13 = pneg %p966_p11 }
  0x17   : > { %p732_p10 = por %p731_p7, %p730_p5 }
  0x18   : > { %p725_p0 = pnand %p724_p13, %p723_p12 }
  0x1a   : > { %p726_p3 = pneg %p725_p0 }
  0x1c   : > { %p733_p9 = pnand %p732_p10, %p726_p3 }
  0x1e   : > { %736 = shalt.err (!%p733_p9)
}
  0x1f   : > { %s872_s8 = smov [#allocation4]   ;;  %s737_s11 = scalar_lea.hbm %s1214_s2, 128 }
  0x20   : > { %656 = dma.vmem_to_smem (!%p966_p11), %s157_s26, 16, %s872_s8, [#allocation7]  }
  0x21   : > { %p738_p1 = scmp.ne.s32.totalorder %s1214_s2, %s737_s11  ;;  %p744_p9 = scmp.lt.u32.totalorder %s737_s11, %s1214_s2 }
  0x23   : > { %p740_p12 = pnand %p738_p1, %p724_p13 }
  0x25   : > { %p741_p0 = pneg %p740_p12 }
  0x27   : > { %p746_p3 = pnand %p744_p9, %p741_p0 }
  0x29   : > { %749 = shalt.err (!%p746_p3)
}
  0x2a   : > { %s750_s16 = scalar_lea.vmem %s970_s29, 128  ;;  %p758_p2 = scmp.lt.s32.totalorder %s970_s29, %s970_s29 }
  0x2b   : > { %p751_p5 = scmp.ne.s32.totalorder %s970_s29, %s750_s16  ;;  %p759_p1 = scmp.lt.s32.totalorder %s750_s16, %s750_s16 }
  0x2d   : > { %p753_p7 = pnand %p751_p5, %p724_p13  ;;  %p760_p12 = por %p759_p1, %p758_p2 }
  0x2f   : > { %p754_p10 = pneg %p753_p7 }
  0x31   : > { %p761_p6 = pnand %p760_p12, %p754_p10 }
  0x33   : > { %764 = shalt.err (!%p761_p6)
}
  0x34   : > { %659 = dma.hbm_to_vmem [thread:$0]  (!%p966_p11), %s1214_s2, 128, %s970_s29, [#allocation5]  }
  0x35   : > { %p91_p2 = scmp.eq.s32.totalorder %s90_s6, 0  ;;  %s93_s25 = sadd.s32 1, %s865_s19 }
  0x36   : > { %p100_p6 = scmp.ne.s32.totalorder %s865_s19, %s861_s18  ;;  %p101_p13 = scmp.eq.s32.totalorder %s869_s20, 0 }
  0x37   : > { %s1017_s26 = scalar_select %p91_p2, %s865_s19, %s93_s25  }
  0x38   : > { %p102_p0 = por %p101_p13, %p100_p6  ;;  %p1224_p9 = scmp.eq.s32.totalorder %s935_s1, 1 }
  0x39   : > { %p670_p5 = scmp.lt.s32.totalorder %s869_s20, 2  ;;  %s181_s30 = sand.u32 1, %s865_s19  }
  0x3a   : > { %p1021_p3 = por %p1224_p9, %p100_p6  ;;  %s609_s7 = sshll.u32 %s181_s30, 3 }
  0x3b   : > { %s639_s8 = sshll.u32 %s869_s20, 7  ;;  %s185_s6 = scalar_lea.vmem [#allocation9], %s609_s7 }
  0x3c   : > { %s1225_s28 = scalar_select %p1021_p3, 1, 0 }
  0x3d   : > { %s1031_s29 = scalar_lea.hbm %s1215_s3, %s639_s8  ;;  %s193_s11 = sshll.u32 %s185_s6, 4  ;;  %s1033_s11 = int_to_ptr.vmem [resolvable:$true] %s193_s11 }
  0x3e   : > { %p1035_p11 = pnand %p670_p5, %p102_p0  ;;  %s182_s13 = scalar_lea.sflag [#allocation10], %s181_s30 }
  0x3f   : > { %s765_s14 = scalar_lea.hbm %s1031_s29, 128  ;;  %s770_s21 = scalar_lea.hbm %s1215_s3, 256 }
  0x40   : > { %p766_p7 = scmp.ne.s32.totalorder %s1031_s29, %s765_s14  ;;  %p767_p10 = pneg %p1035_p11 }
  0x41   : > { %p771_p2 = scmp.lt.u32.totalorder %s1031_s29, %s1215_s3  ;;  %p772_p6 = scmp.lt.u32.totalorder %s770_s21, %s765_s14 }
  0x42   : > { %p768_p1 = pnand %p767_p10, %p766_p7  ;;  %p774_p0 = scmp.lt.u32.totalorder %s765_s14, %s1031_s29 }
  0x43   : > { %p773_p13 = por %p772_p6, %p771_p2 }
  0x44   : > { %p769_p12 = pneg %p768_p1 }
  0x45   : > { %p775_p9 = por %p774_p0, %p773_p13 }
  0x47   : > { %p776_p5 = pnand %p775_p9, %p769_p12 }
  0x49   : > { %779 = shalt.err (!%p776_p5)
}
  0x4a   : > { %s780_s30 = scalar_lea.vmem %s1033_s11, 128  ;;  %s873_s7 = smov [#allocation9]  }
  0x4b   : > { %p781_p7 = scmp.ne.s32.totalorder %s1033_s11, %s780_s30  ;;  %s785_s8 = sshll.u32 %s873_s7, 4  ;;  %s786_s8 = int_to_ptr.vmem [resolvable:$false] %s785_s8 }
  0x4c   : > { %s787_s9 = scalar_lea.vmem %s786_s8, 256  ;;  %p788_p4 = scmp.lt.s32.totalorder %s1033_s11, %s786_s8 }
  0x4d   : > { %p783_p1 = pnand %p781_p7, %p767_p10  ;;  %p789_p2 = scmp.lt.s32.totalorder %s787_s9, %s780_s30 }
  0x4f   : > { %p784_p3 = pneg %p783_p1  ;;  %p790_p6 = por %p789_p2, %p788_p4 }
  0x51   : > { %p791_p13 = pnand %p790_p6, %p784_p3 }
  0x53   : > { %794 = shalt.err (!%p791_p13)
}
  0x54   : > { %663 = dma.hbm_to_vmem [thread:$0]  (!%p1035_p11), %s1031_s29, 128, %s1033_s11, %s182_s13  }
  0x55   : > { %202 = sbr.rel (%p957_p8) target bundleno = 429 (0x1ad), region = 36  ;;  %p1227_p10 = scmp.eq.s32.totalorder (!%p957_p8), %s935_s1, 0 }
  0x5c   : > { %840 = dma.done.wait (%p1227_p10), [#allocation7], 16   ;;  %p1228_p12 = pmov %p1227_p10 }
  0x5d   : > { %p1229_p0 = pmov %p1227_p10 }
  0x5e   : > { %842 = vsyncadd (%p1228_p12), [#allocation7], 4294967280 }
  0x5f   : > { %844 = dma.done.wait (%p1229_p0), [#allocation5], 128   ;;  %p1230_p4 = pmov %p1229_p0 }
  0x60   : > { %s1075_s10 = sand.u32 1, %s861_s18   ;;  %p1231_p8 = scmp.ne.s32.totalorder %s1220_s22, 0 }
  0x61   : > { %846 = vsyncadd (%p1230_p4), [#allocation5], 4294967168  ;;  %s615_s27 = sshll.u32 %s1075_s10, 3  ;;  %s213_s29 = scalar_lea.sflag [#allocation10], %s1075_s10 }
  0x62   : > { %s216_s6 = scalar_lea.vmem [#allocation9], %s615_s27 }
  0x63   : > { %848 = dma.done.wait (%p1231_p8), %s213_s29, 128  }
  0x64   : > { %850 = vsyncadd (%p1231_p8), %s213_s29, 4294967168 }
  0x65   : > { %221 = sfence }
  0x66   : > { %v1085_v0 = vld [vmem:[%s216_s6] sm:$0xff]  ;;  %vm246_vm0 = vcmask 1043456   ;;  %vm275_vm1 = vcmask 1041408   ;;  %vm276_vm2 = vcmask 1043458   ;;  %vm278_vm4 = vcmask 275460   ;;  %s876_s22 = smov 17  }
  0x67   : > { %v244_v1 = vcombine.high %v1085_v0, %v1085_v0  ;;  %v247_v2 = vsel %vm246_vm0, %v1085_v0, 0.0  ;;  %v261_v3 = vsel %vm246_vm0, %v1085_v0, -inf  ;;  %vm277_vm3 = vmor %vm276_vm2, %vm275_vm1  ;;  %v874_v12 = vmov 1966171168   ;;  %s622_s11 = sld [smem:[#allocation4 + $0x3]]  ;;  %s618_s12 = sld [smem:[#allocation4 + $0x1]] }
  0x68   : > { %v248_v4 = vrot.slane %v247_v2, 4  ;;  %v262_v5 = vrot.slane %v261_v3, 4  ;;  %vm279_vm5 = vmor %vm278_vm4, %vm277_vm3  ;;  %v285_v13 = vunpack.c.l.s4 %v874_v12  ;;  %v287_v14 = vlaneseq  ;;  %s623_s13 = sld [smem:[#allocation4 + $0xc]]  ;;  %s619_s14 = sld [smem:[#allocation4 + $0xa]] }
  0x69   : > { %v254_v6 = vsel %vm246_vm0, %v244_v1, 0.0  ;;  %v268_v7 = vsel %vm246_vm0, %v244_v1, -inf  ;;  %v875_v19 = vmov 0.0   ;;  %vm301_vm8 = vcmask 138240   ;;  %s1106_s15 = sld [smem:[#allocation4 + $0x5]]  ;;  %s1108_s16 = sld [smem:[#allocation4 + $0xe]] }
  0x6a   : > { %v249_v8 = vadd.f32 %v248_v4, %v247_v2  ;;  %v255_v9 = vrot.slane %v254_v6, 4  ;;  %v263_v10 = vmax.f32 %v261_v3, %v262_v5  ;;  %v269_v11 = vrot.slane %v268_v7, 4  ;;  %280 = vst.msk [vmem:[#allocation2] sm:$0x3f] %vm279_vm5, %v875_v19  ;;  %s1110_s21 = sld [smem:[#allocation4 + $0xb]]  ;;  %s1112_s24 = sld [smem:[#allocation4 + $0x2]] }
  0x6b   : > { %v286_v24 = vunpack.c.0.s8 %v285_v13  ;;  %v1091_v25 = vshrl.u32 %v287_v14, 7  ;;  %vm1094_vm6 = vcmp.ge.s32.totalorder %v287_v14, 17  ;;  %vm1098_vm7 = vcmp.lt.s32.totalorder %v287_v14, 273  ;;  %s1114_s25 = sld [smem:[#allocation4 + $0x10]]  ;;  %s1118_s7 = sld [smem:[#allocation4 + $0x9]] }
  0x6c   : > { %v250_v15 = vrot.slane %v249_v8, 2  ;;  %v256_v16 = vadd.f32 %v255_v9, %v254_v6  ;;  %v264_v17 = vrot.slane %v263_v10, 2  ;;  %v270_v18 = vmax.f32 %v268_v7, %v269_v11  ;;  %vm307_vm9 = vmand %vm1094_vm6, %vm1098_vm7  ;;  %s1116_s30 = sld [smem:[#allocation4]]  ;;  %s1120_s8 = sld [smem:[#allocation4 + $0xd]] }
  0x6d   : > { %v289_v35 = vsub.s32 %v286_v24, %v1091_v25  ;;  %s1122_s9 = sld [smem:[#allocation4 + $0x7]]  ;;  %v386_v52 = vstv %s622_s11  ;;  %v354_v54 = vstv %s618_s12  ;;  %s1126_s29 = sld [smem:[#allocation4 + $0x4]]  ;;  %vm363_vm10 = vcmask 1039360  }
  0x6e   : > { %v251_v20 = vadd.f32 %v250_v15, %v249_v8  ;;  %v257_v21 = vrot.slane %v256_v16, 2  ;;  %v265_v22 = vmax.f32 %v263_v10, %v264_v17  ;;  %v271_v23 = vrot.slane %v270_v18, 2  ;;  %s1131_s6 = sld [smem:[#allocation4 + $0xf]]  ;;  %s1143_s11 = sld [smem:[#allocation4 + $0x11]] }
  0x6f   : > { %v388_v53 = vstv %s623_s13  ;;  %v356_v55 = vstv %s619_s14  ;;  %v418_v57 = vstv %s1106_s15  ;;  %v420_v58 = vstv %s1108_s16  ;;  %s877_s12 = smov 112   ;;  %s878_s13 = smov 127  }
  0x70   : > { %v252_v26 = vrot.slane %v251_v20, 1  ;;  %v258_v27 = vadd.f32 %v257_v21, %v256_v16  ;;  %v266_v28 = vrot.slane %v265_v22, 1  ;;  %v272_v29 = vmax.f32 %v270_v18, %v271_v23  ;;  %s1146_s14 = sld [smem:[#allocation4 + $0x8]]  ;;  %s879_s15 = smov 110  }
  0x71   : > { %v372_v59 = vstv %s1110_s21  ;;  %v370_v1 = vstv %s1112_s24  ;;  %v452_v2 = vstv %s1114_s25  ;;  %v347_v4 = vstv %s1118_s7  ;;  %s880_s16 = smov 126   ;;  %s881_s21 = smov 95  }
  0x72   : > { %v253_v30 = vadd.f32 %v252_v26, %v251_v20  ;;  %v259_v31 = vrot.slane %v258_v27, 1  ;;  %v267_v32 = vmax.f32 %v265_v22, %v266_v28  ;;  %v273_v33 = vrot.slane %v272_v29, 1  ;;  %s882_s24 = smov 111   ;;  %s883_s25 = smov 96  }
  0x73   : > { %v345_v3 = vstv %s1116_s30  ;;  %v404_v10 = vstv %s1120_s8  ;;  %v450_v14 = vstv %s1122_s9  ;;  %v402_v16 = vstv %s1126_s29  ;;  %s884_s30 = smov 94   ;;  %s340_s7 = sld [smem:[#allocation3]] }
  0x74   : > { %v260_v34 = vadd.f32 %v259_v31, %v258_v27  ;;  %v274_v36 = vmax.f32 %v272_v29, %v273_v33  ;;  %v436_v21 = vstv %s1131_s6  ;;  %v468_v29 = vstv %s1143_s11  ;;  %s640_s8 = sshll.u32 %s935_s1, 7  ;;  %s241_s9 = scalar_lea.vmem [#allocation11], %s615_s27 }
  0x75   : > { %vm395_vm11 = vcmask 916480   ;;  %vm379_vm12 = vcmask 1031168   ;;  %vm427_vm13 = vcmask 900096   ;;  %vm411_vm14 = vcmask 908288   ;;  %s510_s29 = sshll.u32 %s241_s9, 4  ;;  %s1168_s11 = scalar_lea.hbm %s1216_s4, %s640_s8  ;;  %s1170_s29 = int_to_ptr.vmem [resolvable:$true] %s510_s29 }
  0x76   : > { %v283_v37 = vcombine.low %v253_v30, %v260_v34  ;;  %v311_v38 = vcombine.low %v267_v32, %v274_v36  ;;  %v466_v31 = vstv %s1146_s14  ;;  %v335_v36 = vld [vmem:[#allocation8] ss:$4 sm:$0x3]  ;;  %vm459_vm15 = vcmask 777216   ;;  %p1236_p11 = scmp.ne.s32.totalorder %s1225_s28, 0  ;;  %s885_s1 = smov [#allocation11]  }
  0x77   : > { %vm443_vm0 = vcmask 785408   ;;  %vm475_vm1 = vcmask 769024   ;;  %s799_s27 = sshll.u32 %s885_s1, 4  ;;  %s800_s27 = int_to_ptr.vmem [resolvable:$false] %s799_s27 }
  0x78   : > { %v290_v39 = vrot.slane %v283_v37, %v289_v35  ;;  %v318_v40 = vrot.slane %v311_v38, %v289_v35  ;;  %s801_s14 = scalar_lea.vmem %s800_s27, 256  ;;  %p802_p7 = scmp.lt.s32.totalorder %s1170_s29, %s800_s27 }
  0x79   : > { %v341_v43 = vstv %s340_s7 }
  0x7a   : > { %v297_v41 = vrot.slane %v290_v39, %v289_v35  ;;  %v325_v42 = vrot.slane %v318_v40, %v289_v35  ;;  %v337_v39 = vld [vmem:[#allocation8 + $0x1] ss:$4 sm:$0x3] }
  0x7c   : > { %298 = vrot.lane.b32.xlu0 %v297_v41, %s876_s22 }
  0x80   : > { %326 = vrot.lane.b32.xlu0 %v325_v42, %s876_s22  ;;  %s1135_s22 = sld [smem:[#allocation4 + $0x6]] }
  0x86   : > { %v434_v24 = vstv %s1135_s22 }
  0xee   : > { %v299_v45 = vpop.permute.xlu0 %298 }
  0xef   : > { %v300_v46 = vrot.slane %v299_v45, 7 }
  0xf1   : > { %v302_v47 = vsel %vm301_vm8, %v300_v46, %v299_v45 }
  0xf2   : > { %308 = vst.msk [vmem:[#allocation2] ss:$2 sm:$0x7] %vm307_vm9, %v302_v47  ;;  %v327_v48 = vpop.permute.xlu0 %326 }
  0xf3   : > { %v328_v49 = vrot.slane %v327_v48, 7 }
  0xf5   : > { %v329_v50 = vsel %vm301_vm8, %v328_v49, %v327_v48  ;;  %v339_v48 = vld [vmem:[#allocation8 + $0x2] ss:$4 sm:$0x3] }
  0xf6   : > { %332 = vst.msk [vmem:[#allocation2 + $0x1] ss:$2 sm:$0x7] %vm307_vm9, %v329_v50 }
  0xf9   : > { %v1124_v51 = vld [vmem:[#allocation2] ss:$2 sm:$0x7] }
  0xfa   : > { %v387_v60 = vmul.f32 %v386_v52, %v1124_v51  ;;  %v355_v62 = vmul.f32 %v354_v54, %v1124_v51  ;;  %v419_v9 = vmul.f32 %v418_v57, %v1124_v51  ;;  %v371_v11 = vmul.f32 %v370_v1, %v1124_v51 }
  0xfb   : > { %v346_v12 = vmul.f32 %v345_v3, %v1124_v51  ;;  %v451_v22 = vmul.f32 %v450_v14, %v1124_v51  ;;  %v403_v23 = vmul.f32 %v402_v16, %v1124_v51  ;;  %v435_v30 = vmul.f32 %v434_v24, %v1124_v51 }
  0xfc   : > { %v467_v34 = vmul.f32 %v466_v31, %v1124_v51 }
  0xfd   : > { %v334_v56 = vld [vmem:[#allocation2 + $0x1] ss:$2 sm:$0x7] }
  0xfe   : > { %v389_v61 = vmul.f32 %v388_v53, %v334_v56  ;;  %v357_v63 = vmul.f32 %v356_v55, %v334_v56  ;;  %v421_v7 = vmul.f32 %v420_v58, %v334_v56  ;;  %v373_v8 = vmul.f32 %v372_v59, %v334_v56 }
  0xff   : > { %v348_v13 = vmul.f32 %v347_v4, %v334_v56  ;;  %v453_v15 = vmul.f32 %v452_v2, %v334_v56  ;;  %v405_v19 = vmul.f32 %v404_v10, %v334_v56  ;;  %v437_v28 = vmul.f32 %v436_v21, %v334_v56 }
 0x100   : > { %v390_v5 = vadd.f32 %v389_v61, %v387_v60  ;;  %v358_v6 = vadd.f32 %v357_v63, %v355_v62  ;;  %v422_v17 = vadd.f32 %v421_v7, %v419_v9  ;;  %v374_v18 = vadd.f32 %v373_v8, %v371_v11 }
 0x101   : > { %v349_v20 = vadd.f32 %v348_v13, %v346_v12  ;;  %v454_v26 = vadd.f32 %v453_v15, %v451_v22  ;;  %v406_v27 = vadd.f32 %v405_v19, %v403_v23  ;;  %v438_v32 = vadd.f32 %v437_v28, %v435_v30 }
 0x102   : > { %392 = vrot.lane.b32.xlu0 %v390_v5, %s877_s12  ;;  %360 = vrot.lane.b32.xlu1 %v358_v6, %s878_s13  ;;  %v469_v33 = vmul.f32 %v468_v29, %v334_v56  ;;  %v485_v19 = vsub.s32 0, %v1091_v25  ;;  %s496_s12 = scalar_lea.sflag [#allocation6], %s1075_s10  ;;  %s795_s13 = scalar_lea.vmem %s1170_s29, 128 }
 0x103   : > { %v350_v41 = vmul.f32 %v349_v20, %v335_v36  ;;  %v489_v20 = vsub.s32 1, %v1091_v25  ;;  %p796_p3 = scmp.ne.s32.totalorder %s1170_s29, %s795_s13  ;;  %p803_p1 = scmp.lt.s32.totalorder %s801_s14, %s795_s13 }
 0x104   : > { %v470_v35 = vadd.f32 %v469_v33, %v467_v34 }
 0x105   : > { %v351_v50 = vadd.f32 %v350_v41, %v341_v43  ;;  %p797_p9 = pnand %p796_p3, %p1236_p11  ;;  %p804_p2 = por %p803_p1, %p802_p7 }
 0x106   : > { %424 = vrot.lane.b32.xlu0 %v422_v17, %s879_s15  ;;  %376 = vrot.lane.b32.xlu1 %v374_v18, %s880_s16 }
 0x107   : > { %p798_p5 = pneg %p797_p9 }
 0x109   : > { %p805_p6 = pnand %p804_p2, %p798_p5 }
 0x10a   : > { %456 = vrot.lane.b32.xlu0 %v454_v26, %s881_s21  ;;  %408 = vrot.lane.b32.xlu1 %v406_v27, %s882_s24 }
 0x10e   : > { %440 = vrot.lane.b32.xlu1 %v438_v32, %s883_s25 }
 0x112   : > { %472 = vrot.lane.b32.xlu1 %v470_v35, %s884_s30 }
 0x174   : > { %v393_v37 = vpop.permute.xlu0 %392  ;;  %v361_v38 = vpop.permute.xlu1 %360 }
 0x175   : > { %v362_v40 = vrot.slane %v361_v38, 1  ;;  %v394_v42 = vrot.slane %v393_v37, 1 }
 0x177   : > { %v364_v44 = vsel %vm363_vm10, %v361_v38, %v362_v40  ;;  %v396_v51 = vsel %vm395_vm11, %v393_v37, %v394_v42 }
 0x178   : > { %v366_v45 = vmul.f32 %v364_v44, %v337_v39  ;;  %v425_v46 = vpop.permute.xlu0 %424  ;;  %v377_v47 = vpop.permute.xlu1 %376  ;;  %v398_v59 = vmul.f32 %v396_v51, %v335_v36 }
 0x179   : > { %v378_v49 = vrot.slane %v377_v47, 1  ;;  %v426_v52 = vrot.slane %v425_v46, 1 }
 0x17a   : > { %v367_v54 = vadd.f32 %v366_v45, %v351_v50 }
 0x17b   : > { %v380_v53 = vsel %vm379_vm12, %v377_v47, %v378_v49  ;;  %v428_v61 = vsel %vm427_vm13, %v425_v46, %v426_v52 }
 0x17c   : > { %v382_v55 = vmul.f32 %v380_v53, %v339_v48  ;;  %v457_v56 = vpop.permute.xlu0 %456  ;;  %v409_v57 = vpop.permute.xlu1 %408  ;;  %v430_v5 = vmul.f32 %v428_v61, %v339_v48 }
 0x17d   : > { %v410_v58 = vrot.slane %v409_v57, 1  ;;  %v458_v62 = vrot.slane %v457_v56, 1 }
 0x17e   : > { %v383_v60 = vadd.f32 %v382_v55, %v367_v54 }
 0x17f   : > { %v412_v63 = vsel %vm411_vm14, %v409_v57, %v410_v58  ;;  %v460_v7 = vsel %vm459_vm15, %v457_v56, %v458_v62 }
 0x180   : > { %v399_v1 = vadd.f32 %v398_v59, %v383_v60  ;;  %v414_v2 = vmul.f32 %v412_v63, %v337_v39  ;;  %v441_v3 = vpop.permute.xlu1 %440  ;;  %v462_v13 = vmul.f32 %v460_v7, %v337_v39 }
 0x181   : > { %v442_v4 = vrot.slane %v441_v3, 1 }
 0x182   : > { %v415_v6 = vadd.f32 %v414_v2, %v399_v1 }
 0x183   : > { %v444_v8 = vsel %vm443_vm0, %v441_v3, %v442_v4 }
 0x184   : > { %v431_v9 = vadd.f32 %v430_v5, %v415_v6  ;;  %v446_v10 = vmul.f32 %v444_v8, %v335_v36  ;;  %v473_v11 = vpop.permute.xlu1 %472 }
 0x185   : > { %v474_v12 = vrot.slane %v473_v11, 1 }
 0x186   : > { %v447_v14 = vadd.f32 %v446_v10, %v431_v9 }
 0x187   : > { %v476_v15 = vsel %vm475_vm1, %v473_v11, %v474_v12 }
 0x188   : > { %v463_v16 = vadd.f32 %v462_v13, %v447_v14  ;;  %v478_v17 = vmul.f32 %v476_v15, %v339_v48 }
 0x18a   : > { %v479_v18 = vadd.f32 %v478_v17, %v463_v16 }
 0x18c   : > { %720 = vtanh.f32 %v479_v18 }
 0x196   : > { %v721_v21 = vpop.eup %720 }
 0x197   : > { %v481_v22 = vadd.f32 1.0, %v721_v21 }
 0x199   : > { %v486_v23 = vrot.slane %v481_v22, %v485_v19  ;;  %v490_v24 = vrot.slane %v481_v22, %v489_v20 }
 0x19b   : > { %v491_v26 = vcombine.low %v486_v23, %v490_v24 }
 0x19d   : > { %v493_v27 = vmul.f32 %v491_v26, %v1085_v0 }
 0x19f   : > { %494 = vst [vmem:[%s241_s9] sm:$0xff] %v493_v27 }
 0x1a0   : > { %808 = shalt.err (!%p805_p6)
}
 0x1a1   : > { %s809_s10 = scalar_lea.hbm %s1168_s11, 128  ;;  %s813_s21 = scalar_lea.hbm %s1216_s4, 256 }
 0x1a2   : > { %p810_p13 = scmp.ne.s32.totalorder %s1168_s11, %s809_s10  ;;  %p814_p0 = scmp.lt.u32.totalorder %s1168_s11, %s1216_s4 }
 0x1a3   : > { %p815_p4 = scmp.lt.u32.totalorder %s813_s21, %s809_s10  ;;  %p817_p3 = scmp.lt.u32.totalorder %s809_s10, %s1168_s11 }
 0x1a4   : > { %p811_p10 = pnand %p810_p13, %p1236_p11 }
 0x1a5   : > { %p816_p8 = por %p815_p4, %p814_p0 }
 0x1a6   : > { %p812_p12 = pneg %p811_p10 }
 0x1a7   : > { %p818_p9 = por %p817_p3, %p816_p8 }
 0x1a9   : > { %p819_p5 = pnand %p818_p9, %p812_p12 }
 0x1ab   : > { %822 = shalt.err (!%p819_p5)
}
 0x1ac   : > { %651 = dma.vmem_to_hbm [thread:$0]  (%p1236_p11), %s1170_s29, 128, %s1168_s11, %s496_s12  }
 0x1ad PF: > { %s522_s30 = sand.u32 1, %s857_s17   ;;  %p1237_p7 = scmp.ne.s32.totalorder %s1221_s23, 0 }
 0x1ae   : > { %p1238_p1 = scmp.ge.s32.totalorder %s869_s20, 2  ;;  %s523_s7 = scalar_lea.sflag [#allocation6], %s522_s30 }
 0x1b0   : > { %p665_p2 = pnand %p1238_p1, %p1237_p7 }
 0x1b2   : > { %852 = dma.done.wait (!%p665_p2), %s523_s7, 128  }
 0x1b3   : > { %854 = vsyncadd (!%p665_p2), %s523_s7, 4294967168  ;;  %p20_p6 = scmp.ge.s32.totalorder %s973_s5, 4   ;;  %s1239_s17 = smov %s861_s18 }
 0x1b4   : > { %s1240_s18 = smov %s865_s19  ;;  %s1241_s19 = smov %s1017_s26 }
 0x1b5   : > { %s1242_s20 = smov %s973_s5  ;;  %22 = sbr.rel (!%p20_p6) target bundleno = 9 (0x9), region = 94 }
 0x1bc   :  { %528 = vsyncpa [#allocation5], 1 }
 0x1bd   :  { %530 = vsyncpa [#allocation5 + $0x1], 1 }
 0x1be   :  { %531 = vsyncpa [#allocation10], 1 }
 0x1bf   :  { %533 = vsyncpa [#allocation10 + $0x1], 1 }
 0x1c0   :  { %534 = vsyncpa [#allocation6], 1 }
 0x1c1   :  { %536 = vsyncpa [#allocation6 + $0x1], 1 }
 0x1c2   :  { %537 = vsyncpa [#allocation7], 1 }
 0x1c3   :  { %539 = vsyncpa [#allocation7 + $0x1], 1 }

</bundles_post_ra>
